<compile_context>
chip_gen: v7x
topology: tpu7x:2x2x1
jax: 0.10.0
libtpu: 0.0.40
codegen_flags: <defaults>
</compile_context>

<pallas_src>
import jax
import jax.numpy as jnp
from jax.experimental import pallas as pl
from jax.experimental.pallas import tpu as pltpu

LN_EPS = 1e-5       # torch.nn.LayerNorm default eps
SIGMA_EPS = 0.1     # LatentMLP epsilon


def _round_up(x, m):
    return ((x + m - 1) // m) * m


def _layernorm(h, g, b):
    mean = jnp.mean(h, axis=-1, keepdims=True)
    var = jnp.mean(jnp.square(h - mean), axis=-1, keepdims=True)
    return (h - mean) * jax.lax.rsqrt(var + LN_EPS) * g + b


def _softplus(x):
    # numerically stable softplus built from primitive ops (VPU + EUP).
    return jnp.maximum(x, 0.0) + jnp.log1p(jnp.exp(-jnp.abs(x)))


def _make_kernel(n_layers, ln, dim_y):
    def kernel(r_ref, pre_ref, w_ref, vec_ref, hw_ref, hb_ref, out_ref):
        # r_ref   : (rows, H)       bf16   flattened (b,t,n) rows of r
        # pre_ref : (rows, H)       f32    folded (w@W1a + te@W1a + v@W1b + b0)
        # w_ref   : (L, H, H)       bf16   [W1c, W1, W2, ...]
        # vec_ref : (L, 3, H)       f32    [bias, gamma, beta] per layer
        # hw_ref  : (H, P)          bf16   fused [Wmu | Wsig | 0-pad] head
        # hb_ref  : (1, P)          f32    fused [bmu | bsig | 0-pad] bias
        # out_ref : (rows, P)       f32    [mu | sigma | pad]  (lane-dense)

        # --- first hidden layer: r @ W1c + pre (w/v/te/b0 parts pre-folded) ---
        h = jnp.dot(r_ref[...], w_ref[0],
                    preferred_element_type=jnp.float32) + pre_ref[...]
        if ln:
            v0 = vec_ref[0]                              # (3, H) f32
            h = _layernorm(h, v0[1:2], v0[2:3])
        h = jnp.maximum(h, 0.0)

        # --- remaining hidden layers ---
        for l in range(1, n_layers):
            vl = vec_ref[l]                              # (3, H) f32
            h = jnp.dot(h.astype(jnp.bfloat16), w_ref[l],
                        preferred_element_type=jnp.float32) + vl[0:1]
            if ln:
                h = _layernorm(h, vl[1:2], vl[2:3])
            h = jnp.maximum(h, 0.0)

        # --- fused mu / sigma head (single lane-dense matmul + store) ---
        head = jnp.dot(h.astype(jnp.bfloat16), hw_ref[...],
                       preferred_element_type=jnp.float32) + hb_ref[...]
        col = jax.lax.broadcasted_iota(jnp.int32, head.shape, 1)
        is_sigma = (col >= dim_y) & (col < 2 * dim_y)
        sigma = SIGMA_EPS + (1.0 - SIGMA_EPS) * _softplus(head)
        out_ref[...] = jnp.where(is_sigma, sigma, head).astype(out_ref.dtype)

    return kernel


def shared_mtp_decoder(X, v, r, params, *, n_layers, ln=True, row_block=256):
    B, N, dim_x = X.shape
    _, T, H = v.shape
    dim_y = params["wmu"].shape[1]

    # ---------------- host-side (plain JAX) precompute -----------------------
    # Split W0 (3H, H) into its w / v / r blocks once, on the host.
    W0 = params["W0"]
    W1a, W1b, W1c = W0[:H], W0[H:2 * H], W0[2 * H:3 * H]

    # t-invariant input projection, computed ONCE (not per task).
    w = X @ params["wp"] + params["bp"]                    # (B, N, H)
    u = w @ W1a                                            # (B, N, H)
    # 1-row contributions folded into a per-(b,t) bias table.
    bias_bt = (v @ W1b) + (params["task_embedding"] @ W1a)[None] + params["b0"]
    # Per-row additive term for the first hidden layer.
    pre = u[:, None, :, :] + bias_bt[:, :, None, :]        # (B, T, N, H)

    R = B * T * N
    r_rows = r.reshape(R, H)
    pre_rows = pre.reshape(R, H)

    # Pad the row axis to a multiple of the row block (zero rows are harmless).
    rb = min(row_block, _round_up(R, 8))
    Rp = _round_up(R, rb)
    pad = Rp - R
    if pad:
        r_rows = jnp.pad(r_rows, ((0, pad), (0, 0)))
        pre_rows = jnp.pad(pre_rows, ((0, pad), (0, 0)))
    r_rows = r_rows.astype(jnp.bfloat16)
    pre_rows = pre_rows.astype(jnp.float32)

    # Stacked hidden-layer weights (bf16) and vector params (f32).
    W_all = jnp.stack([W1c] + [params[f"W{l}"] for l in range(1, n_layers)],
                      axis=0).astype(jnp.bfloat16)          # (L, H, H)
    vec_rows = []
    for l in range(n_layers):
        b_l = jnp.zeros((1, H), jnp.float32) if l == 0 else params[f"b{l}"]
        g_l = params[f"g{l}"] if ln else jnp.ones((1, H), jnp.float32)
        be_l = params[f"beta{l}"] if ln else jnp.zeros((1, H), jnp.float32)
        vec_rows.append(jnp.concatenate([b_l, g_l, be_l], axis=0))  # (3, H)
    vec = jnp.stack(vec_rows, axis=0).astype(jnp.float32)    # (L, 3, H)

    # Fused, lane-padded head: columns [0:dy]=mu, [dy:2dy]=log_sigma, rest 0.
    P = _round_up(2 * dim_y, 128)
    head_w = jnp.zeros((H, P), jnp.float32)
    head_w = head_w.at[:, :dim_y].set(params["wmu"])
    head_w = head_w.at[:, dim_y:2 * dim_y].set(params["wsig"])
    head_w = head_w.astype(jnp.bfloat16)
    head_b = jnp.zeros((1, P), jnp.float32)
    head_b = head_b.at[:, :dim_y].set(params["bmu"][0])
    head_b = head_b.at[:, dim_y:2 * dim_y].set(params["bsig"][0])

    # ---------------- Pallas call --------------------------------------------
    kernel = _make_kernel(n_layers, ln, dim_y)
    out = pl.pallas_call(
        kernel,
        grid=(Rp // rb,),
        in_specs=[
            pl.BlockSpec((rb, H), lambda i: (i, 0)),
            pl.BlockSpec((rb, H), lambda i: (i, 0)),
            pl.BlockSpec(W_all.shape, lambda i: (0, 0, 0)),
            pl.BlockSpec(vec.shape, lambda i: (0, 0, 0)),
            pl.BlockSpec(head_w.shape, lambda i: (0, 0)),
            pl.BlockSpec(head_b.shape, lambda i: (0, 0)),
        ],
        out_specs=pl.BlockSpec((rb, P), lambda i: (i, 0)),
        out_shape=jax.ShapeDtypeStruct((Rp, P), jnp.float32),
        compiler_params=pltpu.CompilerParams(
            dimension_semantics=("parallel",)),
    )(r_rows, pre_rows, W_all, vec, head_w, head_b)

    out = out[:R].reshape(B, T, N, P)
    mu = out[..., :dim_y]
    sigma = out[..., dim_y:2 * dim_y]
    return mu, sigma


def init_params(key, n_tasks, dim_x, dim_y, dim_hidden, n_layers, ln=True):
    keys = jax.random.split(key, n_layers + 8)
    ki = iter(keys)

    def lin(k, din, dout):
        kw, kb = jax.random.split(k)
        bound = 1.0 / jnp.sqrt(float(din))
        W = jax.random.uniform(kw, (din, dout), jnp.float32, -bound, bound)
        b = jax.random.uniform(kb, (1, dout), jnp.float32, -bound, bound)
        return W, b

    params = {}
    params["wp"], params["bp"] = lin(next(ki), dim_x, dim_hidden)
    params["task_embedding"] = jax.random.normal(next(ki), (n_tasks, dim_hidden),
                                                 jnp.float32)
    din = 3 * dim_hidden
    for l in range(n_layers):
        params[f"W{l}"], params[f"b{l}"] = lin(next(ki), din, dim_hidden)
        if ln:
            params[f"g{l}"] = jnp.ones((1, dim_hidden), jnp.float32)
            params[f"beta{l}"] = jnp.zeros((1, dim_hidden), jnp.float32)
        din = dim_hidden
    params["wmu"], params["bmu"] = lin(next(ki), dim_hidden, dim_y)
    params["wsig"], params["bsig"] = lin(next(ki), dim_hidden, dim_y)
    return params


def reference(X, v, r, params, n_layers, ln=True):
    # pure-JAX f32 replica of the PyTorch forward (training mode)
    w = X @ params["wp"] + params["bp"]                        # (B, N, H)
    B, N, H = w.shape
    T = v.shape[1]
    w = jnp.broadcast_to(w[:, None], (B, T, N, H))
    w = w + params["task_embedding"][None, :, None, :]
    vv = jnp.broadcast_to(v[:, :, None, :], (B, T, N, H))
    h = jnp.concatenate([w, vv, r], axis=-1)
    for l in range(n_layers):
        h = h @ params[f"W{l}"] + params[f"b{l}"]
        if ln:
            mean = h.mean(-1, keepdims=True)
            var = jnp.mean(jnp.square(h - mean), -1, keepdims=True)
            h = (h - mean) / jnp.sqrt(var + LN_EPS) * params[f"g{l}"] + params[f"beta{l}"]
        h = jnp.maximum(h, 0.0)
    mu = h @ params["wmu"] + params["bmu"]
    log_sigma = h @ params["wsig"] + params["bsig"]
    sigma = SIGMA_EPS + (1.0 - SIGMA_EPS) * jax.nn.softplus(log_sigma)
    return mu, sigma


if __name__ == "__main__":
    B, T, N = 2, 3, 8                       # batch, n_tasks, points
    dim_x, dim_y, dim_hidden, n_layers = 16, 4, 32, 2

    key = jax.random.PRNGKey(0)
    k1, k2, k3, kp = jax.random.split(key, 4)
    X = jax.random.normal(k1, (B, N, dim_x), jnp.float32)
    v = jax.random.normal(k2, (B, T, dim_hidden), jnp.float32)
    r = jax.random.normal(k3, (B, T, N, dim_hidden), jnp.float32)
    params = init_params(kp, T, dim_x, dim_y, dim_hidden, n_layers, ln=True)

    mu, sigma = shared_mtp_decoder(X, v, r, params, n_layers=n_layers, ln=True)
    jax.block_until_ready((mu, sigma))

    mu_ref, sigma_ref = reference(X, v, r, params, n_layers, ln=True)
    assert mu.shape == (B, T, N, dim_y) and sigma.shape == (B, T, N, dim_y)
    # matmuls run in bf16 (f32 accumulation) -> slightly looser tolerance
    assert jnp.allclose(mu, mu_ref, atol=5e-2, rtol=5e-2)
    assert jnp.allclose(sigma, sigma_ref, atol=5e-2, rtol=5e-2)
    print("KERNEL_OK")
</pallas_src>

<mosaic_0001>
module attributes {stable_mosaic.version = 11 : i64} {
  func.func @kernel(%arg0: i32, %arg1: memref<48x32xbf16, #tpu.memory_space<vmem>>, %arg2: memref<48x32xf32, #tpu.memory_space<vmem>>, %arg3: memref<2x32x32xbf16, #tpu.memory_space<vmem>>, %arg4: memref<2x3x32xf32, #tpu.memory_space<vmem>>, %arg5: memref<32x128xbf16, #tpu.memory_space<vmem>>, %arg6: memref<1x128xf32, #tpu.memory_space<vmem>>, %arg7: memref<48x128xf32, #tpu.memory_space<vmem>>) attributes {dimension_semantics = [#tpu.dimension_semantics<parallel>], iteration_bounds = array<i64: 1>, scalar_prefetch = 0 : i64, scratch_operands = 0 : i64, tpu.core_type = #tpu.core_type<tc>, window_params = [{transform_indices = @transform_0, window_bounds = array<i64: 48, 32>}, {transform_indices = @transform_1, window_bounds = array<i64: 48, 32>}, {pipeline_mode = #tpu.pipeline_mode<synchronous>, transform_indices = @transform_2, window_bounds = array<i64: 2, 32, 32>}, {pipeline_mode = #tpu.pipeline_mode<synchronous>, transform_indices = @transform_3, window_bounds = array<i64: 2, 3, 32>}, {pipeline_mode = #tpu.pipeline_mode<synchronous>, transform_indices = @transform_4, window_bounds = array<i64: 32, 128>}, {pipeline_mode = #tpu.pipeline_mode<synchronous>, transform_indices = @transform_5, window_bounds = array<i64: 1, 128>}, {transform_indices = @transform_6, window_bounds = array<i64: 48, 128>}]} {
    %c0 = arith.constant 0 : index
    %c0_0 = arith.constant 0 : index
    %0 = vector.load %arg1[%c0, %c0_0] : memref<48x32xbf16, #tpu.memory_space<vmem>>, vector<48x32xbf16>
    %c0_1 = arith.constant 0 : index
    %c0_2 = arith.constant 0 : index
    %c0_3 = arith.constant 0 : index
    %1 = vector.load %arg3[%c0_1, %c0_2, %c0_3] : memref<2x32x32xbf16, #tpu.memory_space<vmem>>, vector<1x32x32xbf16>
    %2 = vector.shape_cast %1 : vector<1x32x32xbf16> to vector<32x32xbf16>
    %cst = arith.constant dense<0.000000e+00> : vector<48x32xf32>
    %3 = tpu.matmul %0, %2, %cst {dimension_numbers = #tpu.dot_dimension_numbers<[1], [0], [0], [1], [0, 0, 1, 1], [], []>} : vector<48x32xbf16>, vector<32x32xbf16>, vector<48x32xf32> -> vector<48x32xf32>
    %c0_4 = arith.constant 0 : index
    %c0_5 = arith.constant 0 : index
    %4 = vector.load %arg2[%c0_4, %c0_5] : memref<48x32xf32, #tpu.memory_space<vmem>>, vector<48x32xf32>
    %5 = arith.addf %3, %4 : vector<48x32xf32>
    %c0_6 = arith.constant 0 : index
    %c0_7 = arith.constant 0 : index
    %c0_8 = arith.constant 0 : index
    %6 = vector.load %arg4[%c0_6, %c0_7, %c0_8] : memref<2x3x32xf32, #tpu.memory_space<vmem>>, vector<1x3x32xf32>
    %7 = vector.shape_cast %6 : vector<1x3x32xf32> to vector<3x32xf32>
    %8 = vector.extract_strided_slice %7 {offsets = [1, 0], sizes = [1, 32], strides = [1, 1]} : vector<3x32xf32> to vector<1x32xf32>
    %9 = vector.extract_strided_slice %7 {offsets = [2, 0], sizes = [1, 32], strides = [1, 1]} : vector<3x32xf32> to vector<1x32xf32>
    %cst_9 = arith.constant dense<0.000000e+00> : vector<48xf32>
    %10 = vector.multi_reduction <add>, %5, %cst_9 [1] : vector<48x32xf32> to vector<48xf32>
    %11 = vector.shape_cast %10 : vector<48xf32> to vector<48x1xf32>
    %cst_10 = arith.constant 3.200000e+01 : f32
    %12 = vector.broadcast %cst_10 : f32 to vector<48x1xf32>
    %13 = arith.divf %11, %12 : vector<48x1xf32>
    %14 = vector.broadcast %13 : vector<48x1xf32> to vector<48x32xf32>
    %15 = arith.subf %5, %14 : vector<48x32xf32>
    %16 = arith.mulf %15, %15 : vector<48x32xf32>
    %cst_11 = arith.constant dense<0.000000e+00> : vector<48xf32>
    %17 = vector.multi_reduction <add>, %16, %cst_11 [1] : vector<48x32xf32> to vector<48xf32>
    %18 = vector.shape_cast %17 : vector<48xf32> to vector<48x1xf32>
    %cst_12 = arith.constant 3.200000e+01 : f32
    %19 = vector.broadcast %cst_12 : f32 to vector<48x1xf32>
    %20 = arith.divf %18, %19 : vector<48x1xf32>
    %21 = vector.broadcast %13 : vector<48x1xf32> to vector<48x32xf32>
    %22 = arith.subf %5, %21 : vector<48x32xf32>
    %cst_13 = arith.constant 9.99999974E-6 : f32
    %23 = vector.broadcast %cst_13 : f32 to vector<48x1xf32>
    %24 = arith.addf %20, %23 : vector<48x1xf32>
    %25 = math.rsqrt %24 : vector<48x1xf32>
    %26 = vector.broadcast %25 : vector<48x1xf32> to vector<48x32xf32>
    %27 = arith.mulf %22, %26 : vector<48x32xf32>
    %28 = vector.broadcast %8 : vector<1x32xf32> to vector<48x32xf32>
    %29 = arith.mulf %27, %28 : vector<48x32xf32>
    %30 = vector.broadcast %9 : vector<1x32xf32> to vector<48x32xf32>
    %31 = arith.addf %29, %30 : vector<48x32xf32>
    %cst_14 = arith.constant 0.000000e+00 : f32
    %32 = vector.broadcast %cst_14 : f32 to vector<48x32xf32>
    %33 = arith.maximumf %31, %32 : vector<48x32xf32>
    %c1 = arith.constant 1 : index
    %c0_15 = arith.constant 0 : index
    %c0_16 = arith.constant 0 : index
    %34 = vector.load %arg4[%c1, %c0_15, %c0_16] : memref<2x3x32xf32, #tpu.memory_space<vmem>>, vector<1x3x32xf32>
    %35 = vector.shape_cast %34 : vector<1x3x32xf32> to vector<3x32xf32>
    %36 = arith.truncf %33 : vector<48x32xf32> to vector<48x32xbf16>
    %c1_17 = arith.constant 1 : index
    %c0_18 = arith.constant 0 : index
    %c0_19 = arith.constant 0 : index
    %37 = vector.load %arg3[%c1_17, %c0_18, %c0_19] : memref<2x32x32xbf16, #tpu.memory_space<vmem>>, vector<1x32x32xbf16>
    %38 = vector.shape_cast %37 : vector<1x32x32xbf16> to vector<32x32xbf16>
    %cst_20 = arith.constant dense<0.000000e+00> : vector<48x32xf32>
    %39 = tpu.matmul %36, %38, %cst_20 {dimension_numbers = #tpu.dot_dimension_numbers<[1], [0], [0], [1], [0, 0, 1, 1], [], []>} : vector<48x32xbf16>, vector<32x32xbf16>, vector<48x32xf32> -> vector<48x32xf32>
    %40 = vector.extract_strided_slice %35 {offsets = [0, 0], sizes = [1, 32], strides = [1, 1]} : vector<3x32xf32> to vector<1x32xf32>
    %41 = vector.broadcast %40 : vector<1x32xf32> to vector<48x32xf32>
    %42 = arith.addf %39, %41 : vector<48x32xf32>
    %43 = vector.extract_strided_slice %35 {offsets = [1, 0], sizes = [1, 32], strides = [1, 1]} : vector<3x32xf32> to vector<1x32xf32>
    %44 = vector.extract_strided_slice %35 {offsets = [2, 0], sizes = [1, 32], strides = [1, 1]} : vector<3x32xf32> to vector<1x32xf32>
    %cst_21 = arith.constant dense<0.000000e+00> : vector<48xf32>
    %45 = vector.multi_reduction <add>, %42, %cst_21 [1] : vector<48x32xf32> to vector<48xf32>
    %46 = vector.shape_cast %45 : vector<48xf32> to vector<48x1xf32>
    %cst_22 = arith.constant 3.200000e+01 : f32
    %47 = vector.broadcast %cst_22 : f32 to vector<48x1xf32>
    %48 = arith.divf %46, %47 : vector<48x1xf32>
    %49 = vector.broadcast %48 : vector<48x1xf32> to vector<48x32xf32>
    %50 = arith.subf %42, %49 : vector<48x32xf32>
    %51 = arith.mulf %50, %50 : vector<48x32xf32>
    %cst_23 = arith.constant dense<0.000000e+00> : vector<48xf32>
    %52 = vector.multi_reduction <add>, %51, %cst_23 [1] : vector<48x32xf32> to vector<48xf32>
    %53 = vector.shape_cast %52 : vector<48xf32> to vector<48x1xf32>
    %cst_24 = arith.constant 3.200000e+01 : f32
    %54 = vector.broadcast %cst_24 : f32 to vector<48x1xf32>
    %55 = arith.divf %53, %54 : vector<48x1xf32>
    %56 = vector.broadcast %48 : vector<48x1xf32> to vector<48x32xf32>
    %57 = arith.subf %42, %56 : vector<48x32xf32>
    %cst_25 = arith.constant 9.99999974E-6 : f32
    %58 = vector.broadcast %cst_25 : f32 to vector<48x1xf32>
    %59 = arith.addf %55, %58 : vector<48x1xf32>
    %60 = math.rsqrt %59 : vector<48x1xf32>
    %61 = vector.broadcast %60 : vector<48x1xf32> to vector<48x32xf32>
    %62 = arith.mulf %57, %61 : vector<48x32xf32>
    %63 = vector.broadcast %43 : vector<1x32xf32> to vector<48x32xf32>
    %64 = arith.mulf %62, %63 : vector<48x32xf32>
    %65 = vector.broadcast %44 : vector<1x32xf32> to vector<48x32xf32>
    %66 = arith.addf %64, %65 : vector<48x32xf32>
    %cst_26 = arith.constant 0.000000e+00 : f32
    %67 = vector.broadcast %cst_26 : f32 to vector<48x32xf32>
    %68 = arith.maximumf %66, %67 : vector<48x32xf32>
    %69 = arith.truncf %68 : vector<48x32xf32> to vector<48x32xbf16>
    %c0_27 = arith.constant 0 : index
    %c0_28 = arith.constant 0 : index
    %70 = vector.load %arg5[%c0_27, %c0_28] : memref<32x128xbf16, #tpu.memory_space<vmem>>, vector<32x128xbf16>
    %cst_29 = arith.constant dense<0.000000e+00> : vector<48x128xf32>
    %71 = tpu.matmul %69, %70, %cst_29 {dimension_numbers = #tpu.dot_dimension_numbers<[1], [0], [0], [1], [0, 0, 1, 1], [], []>} : vector<48x32xbf16>, vector<32x128xbf16>, vector<48x128xf32> -> vector<48x128xf32>
    %c0_30 = arith.constant 0 : index
    %c0_31 = arith.constant 0 : index
    %72 = vector.load %arg6[%c0_30, %c0_31] : memref<1x128xf32, #tpu.memory_space<vmem>>, vector<1x128xf32>
    %73 = vector.broadcast %72 : vector<1x128xf32> to vector<48x128xf32>
    %74 = arith.addf %71, %73 : vector<48x128xf32>
    %75 = tpu.iota {dimensions = array<i32: 1>} : vector<48x128xi32>
    %c4_i32 = arith.constant 4 : i32
    %76 = vector.broadcast %c4_i32 : i32 to vector<48x128xi32>
    %77 = arith.cmpi sge, %75, %76 : vector<48x128xi32>
    %c8_i32 = arith.constant 8 : i32
    %78 = vector.broadcast %c8_i32 : i32 to vector<48x128xi32>
    %79 = arith.cmpi slt, %75, %78 : vector<48x128xi32>
    %80 = arith.andi %77, %79 : vector<48x128xi1>
    %cst_32 = arith.constant 0.000000e+00 : f32
    %81 = vector.broadcast %cst_32 : f32 to vector<48x128xf32>
    %82 = arith.maximumf %74, %81 : vector<48x128xf32>
    %83 = math.absf %74 : vector<48x128xf32>
    %cst_33 = arith.constant 0.000000e+00 : f32
    %84 = vector.broadcast %cst_33 : f32 to vector<48x128xf32>
    %85 = arith.subf %84, %83 : vector<48x128xf32>
    %86 = math.exp %85 : vector<48x128xf32>
    %87 = math.log1p %86 : vector<48x128xf32>
    %88 = arith.addf %82, %87 : vector<48x128xf32>
    %cst_34 = arith.constant 0.899999976 : f32
    %89 = vector.broadcast %cst_34 : f32 to vector<48x128xf32>
    %90 = arith.mulf %89, %88 : vector<48x128xf32>
    %cst_35 = arith.constant 1.000000e-01 : f32
    %91 = vector.broadcast %cst_35 : f32 to vector<48x128xf32>
    %92 = arith.addf %91, %90 : vector<48x128xf32>
    %93 = arith.select %80, %92, %74 : vector<48x128xi1>, vector<48x128xf32>
    %c0_36 = arith.constant 0 : index
    %c0_37 = arith.constant 0 : index
    %94 = vector.load %arg7[%c0_36, %c0_37] : memref<48x128xf32, #tpu.memory_space<vmem>>, vector<48x128xf32>
    tpu.vector_store %arg7[%c0_36, %c0_37], %93 {strides = array<i32>} : memref<48x128xf32, #tpu.memory_space<vmem>>, vector<48x128xf32>,
    return
  }
  func.func @transform_0(%arg0: i32) -> (i32, i32) {
    %c0_i32 = arith.constant 0 : i32
    %c0_i32_0 = arith.constant 0 : i32
    return %arg0, %c0_i32 : i32, i32
  }
  func.func @transform_1(%arg0: i32) -> (i32, i32) {
    %c0_i32 = arith.constant 0 : i32
    %c0_i32_0 = arith.constant 0 : i32
    return %arg0, %c0_i32 : i32, i32
  }
  func.func @transform_2(%arg0: i32) -> (i32, i32, i32) {
    %c0_i32 = arith.constant 0 : i32
    %c0_i32_0 = arith.constant 0 : i32
    %c0_i32_1 = arith.constant 0 : i32
    %c0_i32_2 = arith.constant 0 : i32
    return %c0_i32, %c0_i32_0, %c0_i32_1 : i32, i32, i32
  }
  func.func @transform_3(%arg0: i32) -> (i32, i32, i32) {
    %c0_i32 = arith.constant 0 : i32
    %c0_i32_0 = arith.constant 0 : i32
    %c0_i32_1 = arith.constant 0 : i32
    %c0_i32_2 = arith.constant 0 : i32
    return %c0_i32, %c0_i32_0, %c0_i32_1 : i32, i32, i32
  }
  func.func @transform_4(%arg0: i32) -> (i32, i32) {
    %c0_i32 = arith.constant 0 : i32
    %c0_i32_0 = arith.constant 0 : i32
    %c0_i32_1 = arith.constant 0 : i32
    return %c0_i32, %c0_i32_0 : i32, i32
  }
  func.func @transform_5(%arg0: i32) -> (i32, i32) {
    %c0_i32 = arith.constant 0 : i32
    %c0_i32_0 = arith.constant 0 : i32
    %c0_i32_1 = arith.constant 0 : i32
    return %c0_i32, %c0_i32_0 : i32, i32
  }
  func.func @transform_6(%arg0: i32) -> (i32, i32) {
    %c0_i32 = arith.constant 0 : i32
    %c0_i32_0 = arith.constant 0 : i32
    return %arg0, %c0_i32 : i32, i32
  }
}

</mosaic_0001>

<bundles_post_ra>
// kernel: tpu_custom_call.1
= control target key start
LH: loop header
LB: loop body
LE: loop exit
PB: predicated region body
PF: predicated region fallthrough
CT: control target
= control target key end

     0   :  { %v841_v1 = vmov 0.0   ;;  %vm842_vm0 = vmmov 0   ;;  %vm68_vm1 = vcmask 261120   ;;  %s1114_s0 = inlined_call_operand.vmem [shape: bf16[48,32], index: 0, kind: input, shape index: {}]   ;;  %s1115_s1 = inlined_call_operand.vmem [shape: f32[48,32], index: 1, kind: input, shape index: {}]   ;;  %s1116_s2 = inlined_call_operand.vmem [shape: bf16[2,32,32], index: 2, kind: input, shape index: {}]   ;;  %s1117_s3 = inlined_call_operand.vmem [shape: f32[2,3,32], index: 3, kind: input, shape index: {}]   ;;  %s1118_s4 = inlined_call_operand.vmem [shape: bf16[32,128], index: 4, kind: input, shape index: {}]   ;;  %s1119_s5 = inlined_call_operand.vmem [shape: f32[1,128], index: 5, kind: input, shape index: {}]   ;;  %s1120_s6 = inlined_call_operand.hbm [shape: f32[48,128], index: 6, kind: output, shape index: {}]  }
   0x1   :  { %v760_v0 = vld [vmem:[%s1116_s2] sm:$0xff]   ;;  %703 = vmatprep.subr.bf16.mxu0 %v841_v1  ;;  %751 = vmatprep.subr.bf16.mxu1 %v841_v1  ;;  %v761_v2 = vld [vmem:[%s1116_s2 + $0x8] sm:$0xff]  }
   0x2   :  { %704 = vmatpush3.bf16.msra.mxu0 %v760_v0  ;;  %753 = vmatpush3.bf16.msra.mxu1 %v760_v0  ;;  %v762_v3 = vld [vmem:[%s1114_s0] sm:$0xff]   ;;  %v763_v4 = vld [vmem:[%s1114_s0 + $0x8] sm:$0xff]  }
   0x3   :  { %705 = vmatprep.subr.bf16.mxu0 %v841_v1  ;;  %752 = vmatprep.subr.bf16.mxu1 %v841_v1 }
   0x4   :  { %707 = vmatprep.mubr.msk.bf16.mxu0 %vm842_vm0, %v841_v1  ;;  %711 = vmatprep.mubr.msk.bf16.mxu1 %vm842_vm0, %v841_v1 }
   0x6   :  { %706 = vmatpush3.bf16.msra.mxu0 %v761_v2  ;;  %754 = vmatpush3.bf16.msra.mxu1 %v761_v2 }
   0x7   :  { %719 = vmatprep.subr.bf16.mxu1 %v841_v1  ;;  %735 = vmatprep.subr.bf16.mxu0 %v841_v1 }
   0x8   :  { %11 = vsyncpa [#allocation3], 0  ;;  %v764_v5 = vld [vmem:[%s1114_s0 + $0x10] sm:$0xff]   ;;  %v35_v6 = vld [vmem:[%s1115_s1] sm:$0xff] }
   0x9   :  { %708 = vmatmul.mubr.msk.bf16.vlgmr.msra.gmra.mrb[0].mxu0 %vm68_vm1, %v762_v3  ;;  %712 = vmatmul.mubr.msk.bf16.vlgmr.msra.gmra.mrb[0].mxu1 %vm68_vm1, %v763_v4  ;;  %v37_v7 = vld [vmem:[%s1115_s1 + $0x10] sm:$0xff]  ;;  %v36_v10 = vld [vmem:[%s1115_s1 + $0x8] sm:$0xff]  ;;  %v38_v11 = vld [vmem:[%s1115_s1 + $0x18] sm:$0xff] }
   0xa   :  { %715 = vmatprep.mubr.msk.bf16.mxu1 %vm842_vm0, %v841_v1  ;;  %739 = vmatprep.mubr.msk.bf16.mxu0 %vm842_vm0, %v841_v1  ;;  %v39_v25 = vld [vmem:[%s1115_s1 + $0x20] sm:$0xff]  ;;  %v40_v28 = vld [vmem:[%s1115_s1 + $0x28] sm:$0xff]  ;;  %v765_v3 = vld [vmem:[%s1116_s2 + $0x10] sm:$0xff]  }
   0xb   :  { %720 = vmatpush3.bf16.msra.mxu1 %v765_v3  ;;  %v766_v4 = vld [vmem:[%s1116_s2 + $0x18] sm:$0xff]  }
   0xc   :  { %721 = vmatprep.subr.bf16.mxu1 %v841_v1 }
   0xf   :  { %722 = vmatpush3.bf16.msra.mxu1 %v766_v4 }
  0x11   :  { %716 = vmatmul.mubr.msk.bf16.gmra.mrb[4].mxu1 %vm68_vm1, %v764_v5 }
  0x12   :  { %723 = vmatprep.mubr.msk.bf16.mxu1 %vm842_vm0, %v841_v1 }
  0xdc   :  { %v112_v8 = vpop.f32.mrb[0].mxu0  ;;  %v120_v9 = vpop.f32.mrb[0].mxu1 }
  0xdd   :  { %v113_v12 = vadd.f32 %v112_v8, %v35_v6  ;;  %v121_v13 = vadd.f32 %v120_v9, %v37_v7  ;;  %v709_v14 = vpop.f32.mrb[1].mxu0  ;;  %v713_v15 = vpop.f32.mrb[1].mxu1  ;;  %v215_v7 = vlaneseq }
  0xde   :  { %v115_v16 = vpop.f32.mrb[2].mxu0  ;;  %v123_v17 = vpop.f32.mrb[2].mxu1 }
  0xdf   :  { %v116_v18 = vadd.f32 %v115_v16, %v36_v10  ;;  %v710_v19 = vpop.f32.mrb[3].mxu0  ;;  %v142_v20 = vsel %vm68_vm1, %v121_v13, 0.0  ;;  %v124_v21 = vadd.f32 %v123_v17, %v38_v11  ;;  %v136_v22 = vsel %vm68_vm1, %v113_v12, 0.0  ;;  %v714_v23 = vpop.f32.mrb[3].mxu1 }
  0xe0   :  { %143 = vadd.xlane.f32.xlu1 %v142_v20  ;;  %137 = vadd.xlane.f32.xlu0 %v136_v22 }
  0xe1   :  { %v145_v24 = vsel %vm68_vm1, %v124_v21, 0.0  ;;  %v139_v26 = vsel %vm68_vm1, %v116_v18, 0.0 }
  0xe4   :  { %146 = vadd.xlane.f32.xlu1 %v145_v24  ;;  %v128_v27 = vpop.f32.mrb[4].mxu1  ;;  %140 = vadd.xlane.f32.xlu0 %v139_v26 }
  0xe5   :  { %v129_v29 = vadd.f32 %v128_v27, %v39_v25  ;;  %v717_v30 = vpop.f32.mrb[5].mxu1 }
  0xe6   :  { %v131_v31 = vpop.f32.mrb[6].mxu1 }
  0xe7   :  { %v132_v32 = vadd.f32 %v131_v31, %v40_v28  ;;  %v148_v33 = vsel %vm68_vm1, %v129_v29, 0.0  ;;  %v718_v34 = vpop.f32.mrb[7].mxu1 }
  0xe8   :  { %149 = vadd.xlane.f32.xlu0 %v148_v33 }
  0xe9   :  { %v151_v35 = vsel %vm68_vm1, %v132_v32, 0.0 }
  0xea   :  { %152 = vadd.xlane.f32.xlu1 %v151_v35 }
 0x16d   :  { %v144_v36 = vpop.xlane.xlu1 %143  ;;  %v138_v37 = vpop.xlane.xlu0 %137 }
 0x16e   :  { %v157_v38 = vmul.f32 0.03125, %v144_v36  ;;  %v155_v39 = vmul.f32 0.03125, %v138_v37 }
 0x170   :  { %v939_v40 = vsub.f32 %v121_v13, %v157_v38  ;;  %v941_v41 = vsub.f32 %v113_v12, %v155_v39  ;;  %v977_v13 = vshrl.u32 %v215_v7, 7 }
 0x171   :  { %v147_v42 = vpop.xlane.xlu1 %146  ;;  %v141_v43 = vpop.xlane.xlu0 %140 }
 0x172   :  { %v158_v44 = vmul.f32 0.03125, %v147_v42  ;;  %v156_v45 = vmul.f32 0.03125, %v141_v43  ;;  %v167_v46 = vmul.f32 %v941_v41, %v941_v41  ;;  %v169_v47 = vmul.f32 %v939_v40, %v939_v40 }
 0x173   :  { %v217_v20 = vsub.s32 1, %v977_v13  ;;  %v227_v27 = vsub.s32 2, %v977_v13 }
 0x174   :  { %v947_v48 = vsub.f32 %v124_v21, %v158_v44  ;;  %v949_v49 = vsub.f32 %v116_v18, %v156_v45  ;;  %v173_v50 = vsel %vm68_vm1, %v167_v46, 0.0  ;;  %v179_v55 = vsel %vm68_vm1, %v169_v47, 0.0  ;;  %v135_v21 = vld [vmem:[%s1117_s3] sm:$0x7] }
 0x175   :  { %174 = vadd.xlane.f32.xlu0 %v173_v50  ;;  %v150_v51 = vpop.xlane.xlu0 %149  ;;  %v218_v26 = vrot.slane %v135_v21, %v217_v20  ;;  %v228_v31 = vrot.slane %v135_v21, %v227_v27 }
 0x176   :  { %v159_v52 = vmul.f32 0.03125, %v150_v51  ;;  %v168_v53 = vmul.f32 %v949_v49, %v949_v49  ;;  %v170_v59 = vmul.f32 %v947_v48, %v947_v48 }
 0x177   :  { %v153_v54 = vpop.xlane.xlu1 %152 }
 0x178   :  { %v955_v56 = vsub.f32 %v129_v29, %v159_v52  ;;  %v160_v57 = vmul.f32 0.03125, %v153_v54  ;;  %v176_v58 = vsel %vm68_vm1, %v168_v53, 0.0  ;;  %v182_v62 = vsel %vm68_vm1, %v170_v59, 0.0 }
 0x179   :  { %180 = vadd.xlane.f32.xlu0 %v179_v55  ;;  %177 = vadd.xlane.f32.xlu1 %v176_v58 }
 0x17a   :  { %v960_v60 = vsub.f32 %v132_v32, %v160_v57  ;;  %v171_v61 = vmul.f32 %v955_v56, %v955_v56 }
 0x17c   :  { %v185_v63 = vsel %vm68_vm1, %v171_v61, 0.0  ;;  %v172_v0 = vmul.f32 %v960_v60, %v960_v60 }
 0x17d   :  { %183 = vadd.xlane.f32.xlu1 %v182_v62  ;;  %186 = vadd.xlane.f32.xlu0 %v185_v63  ;;  %v253_v63 = vsub.s32 0, %v977_v13 }
 0x17e   :  { %v188_v2 = vsel %vm68_vm1, %v172_v0, 0.0  ;;  %v1005_v0 = vld [vmem:[%s1117_s3 + $0x4] sm:$0x7] }
 0x181   :  { %189 = vadd.xlane.f32.xlu1 %v188_v2  ;;  %v254_v2 = vrot.slane %v1005_v0, %v253_v63 }
 0x202   :  { %v175_v5 = vpop.xlane.xlu0 %174 }
 0x203   :  { %v191_v6 = vmul.f32 0.03125, %v175_v5 }
 0x205   :  { %v197_v8 = vadd.f32 1e-05, %v191_v6 }
 0x206   :  { %v178_v9 = vpop.xlane.xlu1 %177  ;;  %v181_v10 = vpop.xlane.xlu0 %180 }
 0x207   :  { %769 = vrsqrt.f32 %v197_v8  ;;  %v192_v11 = vmul.f32 0.03125, %v178_v9  ;;  %v193_v12 = vmul.f32 0.03125, %v181_v10 }
 0x209   :  { %v198_v14 = vadd.f32 1e-05, %v192_v11  ;;  %v199_v15 = vadd.f32 1e-05, %v193_v12 }
 0x20a   :  { %v184_v16 = vpop.xlane.xlu1 %183  ;;  %v187_v17 = vpop.xlane.xlu0 %186 }
 0x20b   :  { %771 = vrsqrt.f32 %v198_v14  ;;  %v194_v18 = vmul.f32 0.03125, %v184_v16  ;;  %v195_v19 = vmul.f32 0.03125, %v187_v17 }
 0x20c   :  { %773 = vrsqrt.f32 %v199_v15 }
 0x20d   :  { %v200_v22 = vadd.f32 1e-05, %v194_v18  ;;  %v201_v23 = vadd.f32 1e-05, %v195_v19 }
 0x20e   :  { %v190_v24 = vpop.xlane.xlu1 %189 }
 0x20f   :  { %775 = vrsqrt.f32 %v200_v22  ;;  %v196_v25 = vmul.f32 0.03125, %v190_v24 }
 0x210   :  { %777 = vrsqrt.f32 %v201_v23 }
 0x211   :  { %v770_v28 = vpop.eup %769  ;;  %v202_v29 = vadd.f32 1e-05, %v196_v25 }
 0x212   :  { %v209_v30 = vmul.f32 %v770_v28, %v941_v41 }
 0x213   :  { %779 = vrsqrt.f32 %v202_v29 }
 0x214   :  { %v219_v32 = vmul.f32 %v218_v26, %v209_v30 }
 0x215   :  { %v772_v33 = vpop.eup %771 }
 0x216   :  { %v774_v34 = vpop.eup %773  ;;  %v210_v35 = vmul.f32 %v772_v33, %v949_v49  ;;  %v229_v36 = vadd.f32 %v228_v31, %v219_v32 }
 0x217   :  { %v211_v38 = vmul.f32 %v774_v34, %v939_v40 }
 0x218   :  { %v220_v37 = vmul.f32 %v218_v26, %v210_v35  ;;  %v235_v41 = vmax.f32 %v229_v36, 0.0 }
 0x219   :  { %v776_v39 = vpop.eup %775  ;;  %v221_v46 = vmul.f32 %v218_v26, %v211_v38 }
 0x21a   :  { %v230_v42 = vadd.f32 %v228_v31, %v220_v37  ;;  %v212_v43 = vmul.f32 %v776_v39, %v947_v48  ;;  %v778_v44 = vpop.eup %777 }
 0x21b   :  { %v213_v49 = vmul.f32 %v778_v44, %v955_v56  ;;  %v231_v54 = vadd.f32 %v228_v31, %v221_v46 }
 0x21c   :  { %v236_v45 = vmax.f32 %v230_v42, 0.0  ;;  %v222_v47 = vmul.f32 %v218_v26, %v212_v43 }
 0x21d   :  { %v780_v50 = vpop.eup %779  ;;  %v237_v55 = vmax.f32 %v231_v54, 0.0  ;;  %v223_v57 = vmul.f32 %v218_v26, %v213_v49 }
 0x21e   :  { %v214_v51 = vmul.f32 %v780_v50, %v960_v60  ;;  %v243_v52 = vpack.c.bf16 %v236_v45, %v235_v41  ;;  %v232_v53 = vadd.f32 %v228_v31, %v222_v47 }
 0x21f   :  { %v233_v61 = vadd.f32 %v228_v31, %v223_v57 }
 0x220   :  { %724 = vmatmul.mubr.msk.bf16.vlgmr.msra.gmra.mrb[8].mxu1 %vm68_vm1, %v243_v52  ;;  %v238_v40 = vmax.f32 %v232_v53, 0.0  ;;  %v224_v48 = vmul.f32 %v218_v26, %v214_v51 }
 0x221   :  { %727 = vmatprep.mubr.msk.bf16.mxu1 %vm842_vm0, %v841_v1  ;;  %v239_v56 = vmax.f32 %v233_v61, 0.0 }
 0x222   :  { %v244_v58 = vpack.c.bf16 %v238_v40, %v237_v55  ;;  %v234_v59 = vadd.f32 %v228_v31, %v224_v48 }
 0x224   :  { %v240_v60 = vmax.f32 %v234_v59, 0.0 }
 0x226   :  { %v245_v62 = vpack.c.bf16 %v240_v60, %v239_v56  ;;  %v767_v56 = vld [vmem:[%s1118_s4] sm:$0xff]  }
 0x227   :  { %736 = vmatpush3.bf16.msra.mxu0 %v767_v56 }
 0x228   :  { %728 = vmatmul.mubr.msk.bf16.gmra.mrb[12].mxu1 %vm68_vm1, %v244_v58  ;;  %737 = vmatprep.subr.bf16.mxu0 %v841_v1 }
 0x229   :  { %731 = vmatprep.mubr.msk.bf16.mxu1 %vm842_vm0, %v841_v1 }
 0x230   :  { %732 = vmatmul.mubr.msk.bf16.gmra.mrb[16].mxu1 %vm68_vm1, %v245_v62  ;;  %v768_v62 = vld [vmem:[%s1118_s4 + $0x8] sm:$0xff]  }
 0x231   :  { %738 = vmatpush3.bf16.msra.mxu0 %v768_v62 }
 0x2f3   :  { %v310_v3 = vpop.f32.mrb[8].mxu1 }
 0x2f4   :  { %v311_v4 = vadd.f32 %v310_v3, %v254_v2  ;;  %v725_v5 = vpop.f32.mrb[9].mxu1 }
 0x2f5   :  { %v313_v6 = vpop.f32.mrb[10].mxu1 }
 0x2f6   :  { %v314_v8 = vadd.f32 %v313_v6, %v254_v2  ;;  %v726_v9 = vpop.f32.mrb[11].mxu1  ;;  %v333_v10 = vsel %vm68_vm1, %v311_v4, 0.0 }
 0x2f7   :  { %334 = vadd.xlane.f32.xlu0 %v333_v10 }
 0x2f8   :  { %v336_v11 = vsel %vm68_vm1, %v314_v8, 0.0 }
 0x2f9   :  { %337 = vadd.xlane.f32.xlu1 %v336_v11 }
 0x2fb   :  { %v318_v12 = vpop.f32.mrb[12].mxu1 }
 0x2fc   :  { %v319_v14 = vadd.f32 %v318_v12, %v254_v2  ;;  %v729_v15 = vpop.f32.mrb[13].mxu1 }
 0x2fd   :  { %v321_v16 = vpop.f32.mrb[14].mxu1  ;;  %v414_v15 = vrot.slane %v1005_v0, %v217_v20 }
 0x2fe   :  { %v322_v17 = vadd.f32 %v321_v16, %v254_v2  ;;  %v730_v18 = vpop.f32.mrb[15].mxu1  ;;  %v339_v19 = vsel %vm68_vm1, %v319_v14, 0.0 }
 0x2ff   :  { %340 = vadd.xlane.f32.xlu0 %v339_v19 }
 0x300   :  { %v342_v21 = vsel %vm68_vm1, %v322_v17, 0.0 }
 0x301   :  { %343 = vadd.xlane.f32.xlu1 %v342_v21 }
 0x303   :  { %v326_v22 = vpop.f32.mrb[16].mxu1 }
 0x304   :  { %v327_v23 = vadd.f32 %v326_v22, %v254_v2  ;;  %v733_v24 = vpop.f32.mrb[17].mxu1 }
 0x305   :  { %v329_v25 = vpop.f32.mrb[18].mxu1 }
 0x306   :  { %v330_v26 = vadd.f32 %v329_v25, %v254_v2  ;;  %v734_v28 = vpop.f32.mrb[19].mxu1  ;;  %v345_v29 = vsel %vm68_vm1, %v327_v23, 0.0 }
 0x307   :  { %346 = vadd.xlane.f32.xlu0 %v345_v29 }
 0x308   :  { %v348_v30 = vsel %vm68_vm1, %v330_v26, 0.0 }
 0x309   :  { %349 = vadd.xlane.f32.xlu1 %v348_v30 }
 0x384   :  { %v335_v31 = vpop.xlane.xlu0 %334 }
 0x385   :  { %v351_v32 = vmul.f32 0.03125, %v335_v31 }
 0x386   :  { %v338_v33 = vpop.xlane.xlu1 %337 }
 0x387   :  { %v357_v34 = vsub.f32 %v311_v4, %v351_v32  ;;  %v352_v35 = vmul.f32 0.03125, %v338_v33 }
 0x389   :  { %v358_v36 = vsub.f32 %v314_v8, %v352_v35  ;;  %v363_v37 = vmul.f32 %v357_v34, %v357_v34 }
 0x38b   :  { %v369_v38 = vsel %vm68_vm1, %v363_v37, 0.0  ;;  %v364_v39 = vmul.f32 %v358_v36, %v358_v36 }
 0x38c   :  { %370 = vadd.xlane.f32.xlu0 %v369_v38  ;;  %v341_v42 = vpop.xlane.xlu0 %340 }
 0x38d   :  { %v353_v43 = vmul.f32 0.03125, %v341_v42  ;;  %v372_v44 = vsel %vm68_vm1, %v364_v39, 0.0 }
 0x38e   :  { %v344_v41 = vpop.xlane.xlu1 %343  ;;  %373 = vadd.xlane.f32.xlu1 %v372_v44 }
 0x38f   :  { %v359_v45 = vsub.f32 %v319_v14, %v353_v43  ;;  %v354_v46 = vmul.f32 0.03125, %v344_v41 }
 0x391   :  { %v1016_v47 = vsub.f32 %v322_v17, %v354_v46  ;;  %v365_v50 = vmul.f32 %v359_v45, %v359_v45  ;;  %v424_v17 = vrot.slane %v1005_v0, %v227_v27 }
 0x393   :  { %v375_v51 = vsel %vm68_vm1, %v365_v50, 0.0  ;;  %v366_v52 = vmul.f32 %v1016_v47, %v1016_v47 }
 0x394   :  { %376 = vadd.xlane.f32.xlu0 %v375_v51  ;;  %v347_v53 = vpop.xlane.xlu0 %346 }
 0x395   :  { %v355_v49 = vmul.f32 0.03125, %v347_v53  ;;  %v378_v54 = vsel %vm68_vm1, %v366_v52, 0.0 }
 0x396   :  { %379 = vadd.xlane.f32.xlu1 %v378_v54  ;;  %v350_v40 = vpop.xlane.xlu1 %349 }
 0x397   :  { %v361_v48 = vsub.f32 %v327_v23, %v355_v49  ;;  %v356_v55 = vmul.f32 0.03125, %v350_v40 }
 0x399   :  { %v1022_v57 = vsub.f32 %v330_v26, %v356_v55  ;;  %v367_v58 = vmul.f32 %v361_v48, %v361_v48 }
 0x39b   :  { %v381_v59 = vsel %vm68_vm1, %v367_v58, 0.0  ;;  %v368_v61 = vmul.f32 %v1022_v57, %v1022_v57 }
 0x39c   :  { %382 = vadd.xlane.f32.xlu0 %v381_v59 }
 0x39d   :  { %v384_v60 = vsel %vm68_vm1, %v368_v61, 0.0 }
 0x39e   :  { %385 = vadd.xlane.f32.xlu1 %v384_v60 }
 0x419   :  { %v371_v63 = vpop.xlane.xlu0 %370 }
 0x41a   :  { %v387_v2 = vmul.f32 0.03125, %v371_v63 }
 0x41b   :  { %v374_v3 = vpop.xlane.xlu1 %373 }
 0x41c   :  { %v393_v4 = vadd.f32 1e-05, %v387_v2  ;;  %v388_v5 = vmul.f32 0.03125, %v374_v3 }
 0x41e   :  { %781 = vrsqrt.f32 %v393_v4  ;;  %v394_v6 = vadd.f32 1e-05, %v388_v5 }
 0x420   :  { %783 = vrsqrt.f32 %v394_v6 }
 0x421   :  { %v377_v8 = vpop.xlane.xlu0 %376 }
 0x422   :  { %v389_v9 = vmul.f32 0.03125, %v377_v8 }
 0x423   :  { %v380_v10 = vpop.xlane.xlu1 %379 }
 0x424   :  { %v395_v11 = vadd.f32 1e-05, %v389_v9  ;;  %v390_v12 = vmul.f32 0.03125, %v380_v10 }
 0x426   :  { %785 = vrsqrt.f32 %v395_v11  ;;  %v396_v14 = vadd.f32 1e-05, %v390_v12 }
 0x428   :  { %v782_v16 = vpop.eup %781  ;;  %787 = vrsqrt.f32 %v396_v14 }
 0x429   :  { %v405_v18 = vmul.f32 %v782_v16, %v357_v34  ;;  %v383_v19 = vpop.xlane.xlu0 %382 }
 0x42a   :  { %v784_v21 = vpop.eup %783  ;;  %v391_v22 = vmul.f32 0.03125, %v383_v19 }
 0x42b   :  { %v415_v23 = vmul.f32 %v414_v15, %v405_v18  ;;  %v406_v24 = vmul.f32 %v784_v21, %v358_v36  ;;  %v386_v25 = vpop.xlane.xlu1 %385 }
 0x42c   :  { %v397_v26 = vadd.f32 1e-05, %v391_v22  ;;  %v392_v28 = vmul.f32 0.03125, %v386_v25 }
 0x42d   :  { %v416_v29 = vmul.f32 %v414_v15, %v406_v24  ;;  %v425_v30 = vadd.f32 %v424_v17, %v415_v23 }
 0x42e   :  { %789 = vrsqrt.f32 %v397_v26  ;;  %v398_v31 = vadd.f32 1e-05, %v392_v28 }
 0x42f   :  { %v426_v20 = vadd.f32 %v424_v17, %v416_v29  ;;  %v431_v13 = vmax.f32 %v425_v30, 0.0 }
 0x430   :  { %v786_v32 = vpop.eup %785  ;;  %791 = vrsqrt.f32 %v398_v31 }
 0x431   :  { %v407_v33 = vmul.f32 %v786_v32, %v359_v45  ;;  %v432_v35 = vmax.f32 %v426_v20, 0.0 }
 0x432   :  { %v788_v27 = vpop.eup %787 }
 0x433   :  { %v408_v0 = vmul.f32 %v788_v27, %v1016_v47  ;;  %v437_v34 = vpack.c.bf16 %v432_v35, %v431_v13  ;;  %v417_v37 = vmul.f32 %v414_v15, %v407_v33 }
 0x435   :  { %740 = vmatmul.mubr.msk.bf16.vlgmr.msra.gmra.mrb[4].mxu0 %vm68_vm1, %v437_v34  ;;  %v418_v36 = vmul.f32 %v414_v15, %v408_v0  ;;  %v427_v38 = vadd.f32 %v424_v17, %v417_v37 }
 0x436   :  { %743 = vmatprep.mubr.msk.bf16.mxu0 %vm842_vm0, %v841_v1 }
 0x437   :  { %v428_v39 = vadd.f32 %v424_v17, %v418_v36  ;;  %v433_v44 = vmax.f32 %v427_v38, 0.0  ;;  %v530_v38 = vand.u32 127, %v215_v7 }
 0x438   :  { %v790_v42 = vpop.eup %789 }
 0x439   :  { %v409_v43 = vmul.f32 %v790_v42, %v361_v48  ;;  %v434_v41 = vmax.f32 %v428_v39, 0.0  ;;  %v682_v48 = vld [vmem:[%s1119_s5] ss:$0 sm:$0xff]  ;;  %vm531_vm2 = vcmp.ge.s32.totalorder %v530_v38, 4  ;;  %vm532_vm3 = vcmp.lt.s32.totalorder %v530_v38, 8  ;;  %s843_s5 = smov [#allocation2]  }
 0x43a   :  { %v792_v45 = vpop.eup %791  ;;  %vm1076_vm6 = vmand %vm531_vm2, %vm532_vm3  ;;  %s653_s28 = sshll.u32 %s843_s5, 4  ;;  %s654_s28 = int_to_ptr.vmem [resolvable:$true] %s653_s28 }
 0x43b   :  { %v410_v46 = vmul.f32 %v792_v45, %v1022_v57  ;;  %v438_v50 = vpack.c.bf16 %v434_v41, %v433_v44  ;;  %v419_v51 = vmul.f32 %v414_v15, %v409_v43  ;;  %s817_s29 = scalar_lea.vmem %s654_s28, 768  ;;  %p822_p1 = scmp.lt.s32.totalorder %s654_s28, %s654_s28 }
 0x43c   :  { %p818_p0 = scmp.ne.s32.totalorder %s654_s28, %s817_s29  ;;  %p823_p2 = scmp.lt.s32.totalorder %s817_s29, %s817_s29 }
 0x43d   :  { %744 = vmatmul.mubr.msk.bf16.gmra.mrb[8].mxu0 %vm68_vm1, %v438_v50  ;;  %v420_v47 = vmul.f32 %v414_v15, %v410_v46  ;;  %v429_v52 = vadd.f32 %v424_v17, %v419_v51 }
 0x43e   :  { %747 = vmatprep.mubr.msk.bf16.mxu0 %vm842_vm0, %v841_v1  ;;  %p824_p3 = por %p823_p2, %p822_p1 }
 0x43f   :  { %v430_v53 = vadd.f32 %v424_v17, %v420_v47  ;;  %v435_v49 = vmax.f32 %v429_v52, 0.0 }
 0x440   :  { %p825_p4 = pnand %p824_p3, %p818_p0 }
 0x441   :  { %v436_v54 = vmax.f32 %v430_v53, 0.0 }
 0x443   :  { %v439_v40 = vpack.c.bf16 %v436_v54, %v435_v49 }
 0x445   :  { %748 = vmatmul.mubr.msk.bf16.gmra.mrb[12].mxu0 %vm68_vm1, %v439_v40 }
 0x508   :  { %v506_v55 = vpop.f32.mrb[4].mxu0 }
 0x509   :  { %v1053_v57 = vadd.f32 %v682_v48, %v506_v55  ;;  %v741_v58 = vpop.f32.mrb[5].mxu0 }
 0x50a   :  { %v509_v59 = vpop.f32.mrb[6].mxu0 }
 0x50b   :  { %v540_v61 = vand.u32 2147483647, %v1053_v57  ;;  %v1056_v60 = vadd.f32 %v682_v48, %v509_v59  ;;  %v742_v1 = vpop.f32.mrb[7].mxu0  ;;  %v534_v47 = vmax.f32 %v1053_v57, 0.0 }
 0x50d   :  { %v546_v56 = vsub.f32 0.0, %v540_v61  ;;  %v541_v62 = vand.u32 2147483647, %v1056_v60 }
 0x50f   :  { %v552_v63 = vmul.f32 1.442695, %v546_v56  ;;  %v547_v2 = vsub.f32 0.0, %v541_v62 }
 0x510   :  { %v514_v3 = vpop.f32.mrb[8].mxu0 }
 0x511   :  { %793 = vpow2.f32 %v552_v63  ;;  %v554_v4 = vmul.f32 1.442695, %v547_v2  ;;  %v1059_v5 = vadd.f32 %v682_v48, %v514_v3  ;;  %v745_v6 = vpop.f32.mrb[9].mxu0 }
 0x512   :  { %v517_v8 = vpop.f32.mrb[10].mxu0 }
 0x513   :  { %795 = vpow2.f32 %v554_v4  ;;  %v542_v9 = vand.u32 2147483647, %v1059_v5  ;;  %v1062_v10 = vadd.f32 %v682_v48, %v517_v8  ;;  %v746_v11 = vpop.f32.mrb[11].mxu0 }
 0x515   :  { %v548_v12 = vsub.f32 0.0, %v542_v9  ;;  %v543_v14 = vand.u32 2147483647, %v1062_v10 }
 0x517   :  { %v556_v15 = vmul.f32 1.442695, %v548_v12  ;;  %v549_v16 = vsub.f32 0.0, %v543_v14 }
 0x518   :  { %v522_v17 = vpop.f32.mrb[12].mxu0 }
 0x519   :  { %797 = vpow2.f32 %v556_v15  ;;  %v558_v18 = vmul.f32 1.442695, %v549_v16  ;;  %v1065_v19 = vadd.f32 %v682_v48, %v522_v17  ;;  %v749_v21 = vpop.f32.mrb[13].mxu0 }
 0x51a   :  { %v525_v22 = vpop.f32.mrb[14].mxu0 }
 0x51b   :  { %v794_v23 = vpop.eup %793  ;;  %799 = vpow2.f32 %v558_v18  ;;  %v544_v24 = vand.u32 2147483647, %v1065_v19  ;;  %v1068_v25 = vadd.f32 %v682_v48, %v525_v22  ;;  %v750_v26 = vpop.f32.mrb[15].mxu0  ;;  %v535_v48 = vmax.f32 %v1056_v60, 0.0 }
 0x51c   :  { %v564_v28 = vadd.f32 1.0, %v794_v23  ;;  %v567_v13 = vmul.f32 -0.5, %v794_v23  ;;  %v570_v39 = vand.u32 2147483647, %v794_v23  ;;  %v536_v18 = vmax.f32 %v1059_v5, 0.0 }
 0x51d   :  { %v796_v29 = vpop.eup %795  ;;  %v550_v30 = vsub.f32 0.0, %v544_v24  ;;  %v545_v31 = vand.u32 2147483647, %v1068_v25  ;;  %v537_v22 = vmax.f32 %v1062_v10, 0.0  ;;  %v538_v38 = vmax.f32 %v1065_v19, 0.0 }
 0x51e   :  { %801 = vlog2.f32 %v564_v28  ;;  %v573_v20 = vadd.f32 1.0, %v796_v29  ;;  %v576_v0 = vmul.f32 -0.5, %v796_v29  ;;  %v568_v36 = vadd.f32 1.0, %v567_v13 }
 0x51f   :  { %v560_v32 = vmul.f32 1.442695, %v550_v30  ;;  %v551_v33 = vsub.f32 0.0, %v545_v31  ;;  %v579_v41 = vand.u32 2147483647, %v796_v29 }
 0x520   :  { %803 = vlog2.f32 %v573_v20  ;;  %v577_v43 = vadd.f32 1.0, %v576_v0  ;;  %v569_v46 = vmul.f32 %v794_v23, %v568_v36  ;;  %vm571_vm4 = vcmp.lt.f32.partialorder %v570_v39, 0.0004427343 }
 0x521   :  { %805 = vpow2.f32 %v560_v32  ;;  %v562_v35 = vmul.f32 1.442695, %v551_v33  ;;  %vm580_vm5 = vcmp.lt.f32.partialorder %v579_v41, 0.0004427343 }
 0x522   :  { %v578_v7 = vmul.f32 %v796_v29, %v577_v43 }
 0x523   :  { %v798_v27 = vpop.eup %797  ;;  %807 = vpow2.f32 %v562_v35 }
 0x524   :  { %v582_v34 = vadd.f32 1.0, %v798_v27  ;;  %v585_v50 = vmul.f32 -0.5, %v798_v27  ;;  %v588_v62 = vand.u32 2147483647, %v798_v27 }
 0x525   :  { %v800_v37 = vpop.eup %799 }
 0x526   :  { %809 = vlog2.f32 %v582_v34  ;;  %v591_v42 = vadd.f32 1.0, %v800_v37  ;;  %v594_v54 = vmul.f32 -0.5, %v800_v37  ;;  %v586_v61 = vadd.f32 1.0, %v585_v50 }
 0x527   :  { %v597_v9 = vand.u32 2147483647, %v800_v37  ;;  %vm589_vm7 = vcmp.lt.f32.partialorder %v588_v62, 0.0004427343 }
 0x528   :  { %v802_v44 = vpop.eup %801  ;;  %811 = vlog2.f32 %v591_v42  ;;  %v595_v2 = vadd.f32 1.0, %v594_v54  ;;  %v587_v12 = vmul.f32 %v798_v27, %v586_v61 }
 0x529   :  { %v566_v45 = vmul.f32 0.6931472, %v802_v44  ;;  %vm598_vm8 = vcmp.lt.f32.partialorder %v597_v9, 0.0004427343 }
 0x52a   :  { %v804_v51 = vpop.eup %803  ;;  %v596_v24 = vmul.f32 %v800_v37, %v595_v2 }
 0x52b   :  { %v806_v52 = vpop.eup %805  ;;  %v572_v53 = vsel %vm571_vm4, %v569_v46, %v566_v45  ;;  %v575_v49 = vmul.f32 0.6931472, %v804_v51  ;;  %v539_v46 = vmax.f32 %v1068_v25, 0.0 }
 0x52c   :  { %v618_v40 = vadd.f32 %v572_v53, %v534_v47  ;;  %v600_v55 = vadd.f32 1.0, %v806_v52  ;;  %v603_v14 = vmul.f32 -0.5, %v806_v52  ;;  %v606_v32 = vand.u32 2147483647, %v806_v52 }
 0x52d   :  { %v808_v58 = vpop.eup %807  ;;  %v581_v59 = vsel %vm580_vm5, %v578_v7, %v575_v49 }
 0x52e   :  { %v624_v1 = vmul.f32 0.9, %v618_v40  ;;  %v619_v56 = vadd.f32 %v581_v59, %v535_v48  ;;  %813 = vlog2.f32 %v600_v55  ;;  %v609_v3 = vadd.f32 1.0, %v808_v58 }
 0x52f   :  { %v612_v29 = vmul.f32 -0.5, %v808_v58  ;;  %v615_v37 = vand.u32 2147483647, %v808_v58  ;;  %vm607_vm9 = vcmp.lt.f32.partialorder %v606_v32, 0.0004427343 }
 0x530   :  { %v810_v4 = vpop.eup %809  ;;  %v630_v6 = vadd.f32 0.1, %v624_v1  ;;  %v625_v8 = vmul.f32 0.9, %v619_v56  ;;  %815 = vlog2.f32 %v609_v3 }
 0x531   :  { %v584_v11 = vmul.f32 0.6931472, %v810_v4  ;;  %v613_v27 = vadd.f32 1.0, %v612_v29  ;;  %vm616_vm10 = vcmp.lt.f32.partialorder %v615_v37, 0.0004427343 }
 0x532   :  { %v812_v15 = vpop.eup %811  ;;  %v636_v16 = vsel %vm1076_vm6, %v630_v6, %v1053_v57  ;;  %v631_v17 = vadd.f32 0.1, %v625_v8  ;;  %v604_v57 = vadd.f32 1.0, %v603_v14 }
 0x533   :  { %642 = vst [vmem:[#allocation2] sm:$0xff] %v636_v16  ;;  %v590_v21 = vsel %vm589_vm7, %v587_v12, %v584_v11  ;;  %v593_v23 = vmul.f32 0.6931472, %v812_v15  ;;  %v614_v45 = vmul.f32 %v808_v58, %v613_v27 }
 0x534   :  { %v637_v26 = vsel %vm1076_vm6, %v631_v17, %v1056_v60  ;;  %v620_v28 = vadd.f32 %v590_v21, %v536_v18  ;;  %v605_v34 = vmul.f32 %v806_v52, %v604_v57 }
 0x535   :  { %643 = vst [vmem:[#allocation2 + $0x8] sm:$0xff] %v637_v26  ;;  %v599_v30 = vsel %vm598_vm8, %v596_v24, %v593_v23 }
 0x536   :  { %v626_v31 = vmul.f32 0.9, %v620_v28  ;;  %v621_v20 = vadd.f32 %v599_v30, %v537_v22 }
 0x538   :  { %v814_v33 = vpop.eup %813  ;;  %v632_v13 = vadd.f32 0.1, %v626_v31  ;;  %v627_v35 = vmul.f32 0.9, %v621_v20 }
 0x539   :  { %v602_v0 = vmul.f32 0.6931472, %v814_v33 }
 0x53a   :  { %v638_v60 = vsel %vm1076_vm6, %v632_v13, %v1059_v5  ;;  %v633_v36 = vadd.f32 0.1, %v627_v35  ;;  %v816_v39 = vpop.eup %815 }
 0x53b   :  { %644 = vst [vmem:[#allocation2 + $0x10] sm:$0xff] %v638_v60  ;;  %v608_v42 = vsel %vm607_vm9, %v605_v34, %v602_v0  ;;  %v611_v41 = vmul.f32 0.6931472, %v816_v39 }
 0x53c   :  { %v639_v43 = vsel %vm1076_vm6, %v633_v36, %v1062_v10  ;;  %v622_v44 = vadd.f32 %v608_v42, %v538_v38 }
 0x53d   :  { %645 = vst [vmem:[#allocation2 + $0x18] sm:$0xff] %v639_v43  ;;  %v617_v5 = vsel %vm616_vm10, %v614_v45, %v611_v41 }
 0x53e   :  { %v628_v50 = vmul.f32 0.9, %v622_v44  ;;  %v623_v51 = vadd.f32 %v617_v5, %v539_v46 }
 0x540   :  { %v634_v47 = vadd.f32 0.1, %v628_v50  ;;  %v629_v52 = vmul.f32 0.9, %v623_v51 }
 0x542   :  { %v640_v53 = vsel %vm1076_vm6, %v634_v47, %v1065_v19  ;;  %v635_v10 = vadd.f32 0.1, %v629_v52 }
 0x543   :  { %646 = vst [vmem:[#allocation2 + $0x20] sm:$0xff] %v640_v53 }
 0x544   :  { %v641_v49 = vsel %vm1076_vm6, %v635_v10, %v1068_v25 }
 0x545   :  { %647 = vst [vmem:[#allocation2 + $0x28] sm:$0xff] %v641_v49 }
 0x546   :  { %828 = shalt.err (!%p825_p4)
}
 0x547   :  { %s829_s8 = scalar_lea.hbm %s1120_s6, 768 }
 0x548   :  { %p830_p5 = scmp.ne.s32.totalorder %s1120_s6, %s829_s8  ;;  %p833_p6 = scmp.lt.u32.totalorder %s829_s8, %s1120_s6 }
 0x54a   :  { %p835_p7 = pnand %p833_p6, %p830_p5 }
 0x54c   :  { %838 = shalt.err (!%p835_p7)
}
 0x54d   :  { %s844_s0 = smov 128   ;;  %s845_s13 = smov 8  }
 0x54e   :  { %659 = dma.vmem_to_hbm [thread:$0]  %s654_s28, 768, %s1120_s6, [#allocation3], %s844_s0, %s844_s0, %s845_s13  }
 0x54f   :  { %839 = dma.done.wait [#allocation3], 768  }
 0x550   :  { %840 = vsyncadd [#allocation3], 4294966528 }
 0x551   :  { %663 = vsyncpa [#allocation3], 1 }

</bundles_post_ra>
